<compile_context>
chip_gen: v5e
topology: v5e:2x2
jax: 0.10.0
libtpu: 0.0.40
codegen_flags: <defaults>
</compile_context>

<pallas_src>
import jax
import jax.numpy as jnp
from jax.experimental import pallas as pl
from jax.experimental.pallas import tpu as pltpu

_MIB = 1024 * 1024


def _normalize_pool_size(pool_size):
    if isinstance(pool_size, int):
        return pool_size, pool_size
    ph, pw = pool_size
    return int(ph), int(pw)


def _adaptive_bounds(in_size: int, out_size: int):
    """PyTorch adaptive pooling: window i covers [floor(i*in/out), ceil((i+1)*in/out))."""
    bounds = []
    for i in range(out_size):
        start = (i * in_size) // out_size
        end = -((-(i + 1) * in_size) // out_size)  # ceil division
        bounds.append((start, end))
    return tuple(bounds)


def _make_pool_kernel(h_bounds, w_bounds):
    """Kernel over a block of planes: x_ref (bp, H, W) -> o_ref (bp, ph, pw)."""

    def kernel(x_ref, o_ref):
        for i, (h0, h1) in enumerate(h_bounds):            # static, unrolled at trace time
            # H-window reduce (across sublanes) -> (bp, W); recomputed per output
            # row so overlapping adaptive windows stay correct.
            row = jnp.max(x_ref[:, h0:h1, :], axis=1)
            cols = [jnp.max(row[:, w0:w1], axis=1, keepdims=True)  # lane reduce -> (bp, 1)
                    for (w0, w1) in w_bounds]
            out_row = jnp.concatenate(cols, axis=1)        # (bp, pw)
            o_ref[:, i:i + 1, :] = out_row[:, None, :]     # streaming per-row store

    return kernel


def adaptive_max_pool2d_pallas(x: jnp.ndarray, pool_size) -> jnp.ndarray:
    """x: (N, C, H, W) -> (N, C, Ph*Pw); matches F.adaptive_max_pool2d(x, pool_size).flatten(2)."""
    ph, pw = _normalize_pool_size(pool_size)
    N, C, H, W = x.shape
    dtype = x.dtype
    itemsize = jnp.dtype(dtype).itemsize
    P = N * C

    h_bounds = _adaptive_bounds(H, ph)
    w_bounds = _adaptive_bounds(W, pw)

    # Free view: contiguous leading-dim merge, no transpose / pad / extra HBM pass.
    xf = x.reshape(P, H, W)

    # VMEM-padded per-plane footprint (W on lanes, H on dtype-packed sublanes).
    sub_pack = max(1, 32 // itemsize)                   # 8 f32, 16 bf16, 32 int8
    lane_w = -(-W // 128) * 128
    sub_h = -(-H // sub_pack) * sub_pack
    per_plane_in = sub_h * lane_w * itemsize
    per_plane_out = (-(-ph // sub_pack) * sub_pack) * (-(-pw // 128) * 128) * itemsize

    try:
        vmem_cap = int(pltpu.get_tpu_info().vmem_capacity_bytes)
    except Exception:
        vmem_cap = 64 * _MIB  # conservative off-TPU fallback; real cap queried on device

    # Absolute block target: ~10.7 MiB on v7x (64 MiB VMEM), ~21 MiB on v5e/v6e (128 MiB).
    target_block = min(max(vmem_cap // 6, 8 * _MIB), 24 * _MIB)
    # Keep grid >= 4 when possible: >= 2 blocks per TensorCore on v7x and room
    # for BlockSpec double-buffering to overlap DMA with compute.
    bp = max(1, min(target_block // per_plane_in, -(-P // 4)))
    bp = int(min(bp, P))
    # TODO(synk): tile H along contiguous h_bounds groups (extra grid axis) when a
    # single (H, W) plane exceeds the block target (very large maps on v7x's 64 MiB VMEM).

    block_bytes = bp * (per_plane_in + per_plane_out)
    vmem_limit = int(min(vmem_cap, max(32 * _MIB, 2 * block_bytes + 4 * _MIB)))

    out = pl.pallas_call(
        _make_pool_kernel(h_bounds, w_bounds),
        out_shape=jax.ShapeDtypeStruct((P, ph, pw), dtype),
        grid=(pl.cdiv(P, bp),),  # ragged last block is masked by Pallas; no jnp.pad pass
        in_specs=[pl.BlockSpec((bp, H, W), lambda b: (b, 0, 0))],
        out_specs=pl.BlockSpec((bp, ph, pw), lambda b: (b, 0, 0)),
        compiler_params=pltpu.CompilerParams(
            dimension_semantics=("parallel",),
            vmem_limit_bytes=vmem_limit,
        ),
    )(xf)

    # (P, ph, pw) -> (N, C, ph*pw): contiguous split/merge, tiny tensor, free.
    return out.reshape(N, C, ph * pw)


class MaxPoolPallas:
    """Mirror of SPEN MaxPool. No learnable parameters."""

    def __init__(self, pool_size, single: bool = False):
        self.pool_size = pool_size
        self.single = single

    def __call__(self, x):
        pooled = adaptive_max_pool2d_pallas(x, self.pool_size)
        if self.single:
            return pooled
        pos_feature = pooled
        ori_feature = pos_feature
        return (pos_feature, ori_feature)


def _reference_adaptive_max_pool(x, pool_size):
    """Pure-JAX reference with PyTorch adaptive_max_pool2d window semantics."""
    ph, pw = _normalize_pool_size(pool_size)
    N, C, H, W = x.shape
    h_bounds = _adaptive_bounds(H, ph)
    w_bounds = _adaptive_bounds(W, pw)
    rows = []
    for (h0, h1) in h_bounds:
        cols = []
        for (w0, w1) in w_bounds:
            cols.append(jnp.max(x[:, :, h0:h1, w0:w1], axis=(2, 3)))  # (N, C)
        rows.append(jnp.stack(cols, axis=-1))                          # (N, C, pw)
    return jnp.stack(rows, axis=-2).reshape(N, C, ph * pw)


if __name__ == "__main__":
    key = jax.random.PRNGKey(0)
    x = jax.random.normal(key, (2, 4, 16, 16), dtype=jnp.float32)

    # Divisible case (pool 16x16 -> 4x4), tuple output path.
    module = MaxPoolPallas(pool_size=(4, 4), single=False)
    pos_feature, ori_feature = module(x)
    jax.block_until_ready(pos_feature)
    jax.block_until_ready(ori_feature)
    ref = _reference_adaptive_max_pool(x, (4, 4))
    assert pos_feature.shape == (2, 4, 16)
    assert ori_feature.shape == (2, 4, 16)
    assert jnp.allclose(pos_feature, ref), "mismatch vs reference (4,4)"
    assert jnp.allclose(ori_feature, pos_feature)

    # Non-divisible (truly adaptive, overlapping windows), single output path.
    out_adapt = MaxPoolPallas(pool_size=(3, 5), single=True)(x)
    jax.block_until_ready(out_adapt)
    ref_adapt = _reference_adaptive_max_pool(x, (3, 5))
    assert out_adapt.shape == (2, 4, 15)
    assert jnp.allclose(out_adapt, ref_adapt), "mismatch vs reference (3,5)"

    # Ragged grid: N*C = 5 planes with bp = 2 -> last block partially out-of-bounds,
    # odd spatial dims (13x9), to exercise the no-pad masked path.
    key3 = jax.random.PRNGKey(1)
    x3 = jax.random.normal(key3, (1, 5, 13, 9), dtype=jnp.float32)
    out3 = MaxPoolPallas(pool_size=(2, 3), single=True)(x3)
    jax.block_until_ready(out3)
    ref3 = _reference_adaptive_max_pool(x3, (2, 3))
    assert out3.shape == (1, 5, 6)
    assert jnp.allclose(out3, ref3), "mismatch vs reference (2,3) ragged"

    print("KERNEL_OK")
</pallas_src>

<mosaic_0001>
module attributes {stable_mosaic.version = 11 : i64} {
  func.func @kernel(%arg0: i32, %arg1: memref<2x16x16xf32, #tpu.memory_space<vmem>>, %arg2: memref<2x4x4xf32, #tpu.memory_space<vmem>>) attributes {dimension_semantics = [#tpu.dimension_semantics<parallel>], iteration_bounds = array<i64: 4>, scalar_prefetch = 0 : i64, scratch_operands = 0 : i64, tpu.core_type = #tpu.core_type<tc>, window_params = [{transform_indices = @transform_0, window_bounds = array<i64: 2, 16, 16>}, {transform_indices = @transform_1, window_bounds = array<i64: 2, 4, 4>}]} {
    %c0 = arith.constant 0 : index
    %c0_0 = arith.constant 0 : index
    %c0_1 = arith.constant 0 : index
    %0 = vector.load %arg1[%c0, %c0_0, %c0_1] : memref<2x16x16xf32, #tpu.memory_space<vmem>>, vector<2x4x16xf32>
    %cst = arith.constant dense<0xFF800000> : vector<2x16xf32>
    %1 = vector.multi_reduction <maximumf>, %0, %cst [1] : vector<2x4x16xf32> to vector<2x16xf32>
    %2 = vector.extract_strided_slice %1 {offsets = [0, 0], sizes = [2, 4], strides = [1, 1]} : vector<2x16xf32> to vector<2x4xf32>
    %cst_2 = arith.constant dense<0xFF800000> : vector<2xf32>
    %3 = vector.multi_reduction <maximumf>, %2, %cst_2 [1] : vector<2x4xf32> to vector<2xf32>
    %4 = vector.shape_cast %3 : vector<2xf32> to vector<2x1xf32>
    %5 = vector.extract_strided_slice %1 {offsets = [0, 4], sizes = [2, 4], strides = [1, 1]} : vector<2x16xf32> to vector<2x4xf32>
    %cst_3 = arith.constant dense<0xFF800000> : vector<2xf32>
    %6 = vector.multi_reduction <maximumf>, %5, %cst_3 [1] : vector<2x4xf32> to vector<2xf32>
    %7 = vector.shape_cast %6 : vector<2xf32> to vector<2x1xf32>
    %8 = vector.extract_strided_slice %1 {offsets = [0, 8], sizes = [2, 4], strides = [1, 1]} : vector<2x16xf32> to vector<2x4xf32>
    %cst_4 = arith.constant dense<0xFF800000> : vector<2xf32>
    %9 = vector.multi_reduction <maximumf>, %8, %cst_4 [1] : vector<2x4xf32> to vector<2xf32>
    %10 = vector.shape_cast %9 : vector<2xf32> to vector<2x1xf32>
    %11 = vector.extract_strided_slice %1 {offsets = [0, 12], sizes = [2, 4], strides = [1, 1]} : vector<2x16xf32> to vector<2x4xf32>
    %cst_5 = arith.constant dense<0xFF800000> : vector<2xf32>
    %12 = vector.multi_reduction <maximumf>, %11, %cst_5 [1] : vector<2x4xf32> to vector<2xf32>
    %13 = vector.shape_cast %12 : vector<2xf32> to vector<2x1xf32>
    %14 = tpu.concatenate %4, %7, %10, %13 in 1 : vector<2x1xf32>, vector<2x1xf32>, vector<2x1xf32>, vector<2x1xf32> -> vector<2x4xf32>
    %15 = vector.shape_cast %14 : vector<2x4xf32> to vector<2x1x4xf32>
    %c0_6 = arith.constant 0 : index
    %c0_7 = arith.constant 0 : index
    %c0_8 = arith.constant 0 : index
    %16 = vector.load %arg2[%c0_6, %c0_7, %c0_8] : memref<2x4x4xf32, #tpu.memory_space<vmem>>, vector<2x1x4xf32>
    tpu.vector_store %arg2[%c0_6, %c0_7, %c0_8], %15 {strides = array<i32>} : memref<2x4x4xf32, #tpu.memory_space<vmem>>, vector<2x1x4xf32>,
    %c0_9 = arith.constant 0 : index
    %c4 = arith.constant 4 : index
    %c0_10 = arith.constant 0 : index
    %17 = vector.load %arg1[%c0_9, %c4, %c0_10] : memref<2x16x16xf32, #tpu.memory_space<vmem>>, vector<2x4x16xf32>
    %cst_11 = arith.constant dense<0xFF800000> : vector<2x16xf32>
    %18 = vector.multi_reduction <maximumf>, %17, %cst_11 [1] : vector<2x4x16xf32> to vector<2x16xf32>
    %19 = vector.extract_strided_slice %18 {offsets = [0, 0], sizes = [2, 4], strides = [1, 1]} : vector<2x16xf32> to vector<2x4xf32>
    %cst_12 = arith.constant dense<0xFF800000> : vector<2xf32>
    %20 = vector.multi_reduction <maximumf>, %19, %cst_12 [1] : vector<2x4xf32> to vector<2xf32>
    %21 = vector.shape_cast %20 : vector<2xf32> to vector<2x1xf32>
    %22 = vector.extract_strided_slice %18 {offsets = [0, 4], sizes = [2, 4], strides = [1, 1]} : vector<2x16xf32> to vector<2x4xf32>
    %cst_13 = arith.constant dense<0xFF800000> : vector<2xf32>
    %23 = vector.multi_reduction <maximumf>, %22, %cst_13 [1] : vector<2x4xf32> to vector<2xf32>
    %24 = vector.shape_cast %23 : vector<2xf32> to vector<2x1xf32>
    %25 = vector.extract_strided_slice %18 {offsets = [0, 8], sizes = [2, 4], strides = [1, 1]} : vector<2x16xf32> to vector<2x4xf32>
    %cst_14 = arith.constant dense<0xFF800000> : vector<2xf32>
    %26 = vector.multi_reduction <maximumf>, %25, %cst_14 [1] : vector<2x4xf32> to vector<2xf32>
    %27 = vector.shape_cast %26 : vector<2xf32> to vector<2x1xf32>
    %28 = vector.extract_strided_slice %18 {offsets = [0, 12], sizes = [2, 4], strides = [1, 1]} : vector<2x16xf32> to vector<2x4xf32>
    %cst_15 = arith.constant dense<0xFF800000> : vector<2xf32>
    %29 = vector.multi_reduction <maximumf>, %28, %cst_15 [1] : vector<2x4xf32> to vector<2xf32>
    %30 = vector.shape_cast %29 : vector<2xf32> to vector<2x1xf32>
    %31 = tpu.concatenate %21, %24, %27, %30 in 1 : vector<2x1xf32>, vector<2x1xf32>, vector<2x1xf32>, vector<2x1xf32> -> vector<2x4xf32>
    %32 = vector.shape_cast %31 : vector<2x4xf32> to vector<2x1x4xf32>
    %c0_16 = arith.constant 0 : index
    %c1 = arith.constant 1 : index
    %c0_17 = arith.constant 0 : index
    %33 = vector.load %arg2[%c0_16, %c1, %c0_17] : memref<2x4x4xf32, #tpu.memory_space<vmem>>, vector<2x1x4xf32>
    tpu.vector_store %arg2[%c0_16, %c1, %c0_17], %32 {strides = array<i32>} : memref<2x4x4xf32, #tpu.memory_space<vmem>>, vector<2x1x4xf32>,
    %c0_18 = arith.constant 0 : index
    %c8 = arith.constant 8 : index
    %c0_19 = arith.constant 0 : index
    %34 = vector.load %arg1[%c0_18, %c8, %c0_19] : memref<2x16x16xf32, #tpu.memory_space<vmem>>, vector<2x4x16xf32>
    %cst_20 = arith.constant dense<0xFF800000> : vector<2x16xf32>
    %35 = vector.multi_reduction <maximumf>, %34, %cst_20 [1] : vector<2x4x16xf32> to vector<2x16xf32>
    %36 = vector.extract_strided_slice %35 {offsets = [0, 0], sizes = [2, 4], strides = [1, 1]} : vector<2x16xf32> to vector<2x4xf32>
    %cst_21 = arith.constant dense<0xFF800000> : vector<2xf32>
    %37 = vector.multi_reduction <maximumf>, %36, %cst_21 [1] : vector<2x4xf32> to vector<2xf32>
    %38 = vector.shape_cast %37 : vector<2xf32> to vector<2x1xf32>
    %39 = vector.extract_strided_slice %35 {offsets = [0, 4], sizes = [2, 4], strides = [1, 1]} : vector<2x16xf32> to vector<2x4xf32>
    %cst_22 = arith.constant dense<0xFF800000> : vector<2xf32>
    %40 = vector.multi_reduction <maximumf>, %39, %cst_22 [1] : vector<2x4xf32> to vector<2xf32>
    %41 = vector.shape_cast %40 : vector<2xf32> to vector<2x1xf32>
    %42 = vector.extract_strided_slice %35 {offsets = [0, 8], sizes = [2, 4], strides = [1, 1]} : vector<2x16xf32> to vector<2x4xf32>
    %cst_23 = arith.constant dense<0xFF800000> : vector<2xf32>
    %43 = vector.multi_reduction <maximumf>, %42, %cst_23 [1] : vector<2x4xf32> to vector<2xf32>
    %44 = vector.shape_cast %43 : vector<2xf32> to vector<2x1xf32>
    %45 = vector.extract_strided_slice %35 {offsets = [0, 12], sizes = [2, 4], strides = [1, 1]} : vector<2x16xf32> to vector<2x4xf32>
    %cst_24 = arith.constant dense<0xFF800000> : vector<2xf32>
    %46 = vector.multi_reduction <maximumf>, %45, %cst_24 [1] : vector<2x4xf32> to vector<2xf32>
    %47 = vector.shape_cast %46 : vector<2xf32> to vector<2x1xf32>
    %48 = tpu.concatenate %38, %41, %44, %47 in 1 : vector<2x1xf32>, vector<2x1xf32>, vector<2x1xf32>, vector<2x1xf32> -> vector<2x4xf32>
    %49 = vector.shape_cast %48 : vector<2x4xf32> to vector<2x1x4xf32>
    %c0_25 = arith.constant 0 : index
    %c2 = arith.constant 2 : index
    %c0_26 = arith.constant 0 : index
    %50 = vector.load %arg2[%c0_25, %c2, %c0_26] : memref<2x4x4xf32, #tpu.memory_space<vmem>>, vector<2x1x4xf32>
    tpu.vector_store %arg2[%c0_25, %c2, %c0_26], %49 {strides = array<i32>} : memref<2x4x4xf32, #tpu.memory_space<vmem>>, vector<2x1x4xf32>,
    %c0_27 = arith.constant 0 : index
    %c12 = arith.constant 12 : index
    %c0_28 = arith.constant 0 : index
    %51 = vector.load %arg1[%c0_27, %c12, %c0_28] : memref<2x16x16xf32, #tpu.memory_space<vmem>>, vector<2x4x16xf32>
    %cst_29 = arith.constant dense<0xFF800000> : vector<2x16xf32>
    %52 = vector.multi_reduction <maximumf>, %51, %cst_29 [1] : vector<2x4x16xf32> to vector<2x16xf32>
    %53 = vector.extract_strided_slice %52 {offsets = [0, 0], sizes = [2, 4], strides = [1, 1]} : vector<2x16xf32> to vector<2x4xf32>
    %cst_30 = arith.constant dense<0xFF800000> : vector<2xf32>
    %54 = vector.multi_reduction <maximumf>, %53, %cst_30 [1] : vector<2x4xf32> to vector<2xf32>
    %55 = vector.shape_cast %54 : vector<2xf32> to vector<2x1xf32>
    %56 = vector.extract_strided_slice %52 {offsets = [0, 4], sizes = [2, 4], strides = [1, 1]} : vector<2x16xf32> to vector<2x4xf32>
    %cst_31 = arith.constant dense<0xFF800000> : vector<2xf32>
    %57 = vector.multi_reduction <maximumf>, %56, %cst_31 [1] : vector<2x4xf32> to vector<2xf32>
    %58 = vector.shape_cast %57 : vector<2xf32> to vector<2x1xf32>
    %59 = vector.extract_strided_slice %52 {offsets = [0, 8], sizes = [2, 4], strides = [1, 1]} : vector<2x16xf32> to vector<2x4xf32>
    %cst_32 = arith.constant dense<0xFF800000> : vector<2xf32>
    %60 = vector.multi_reduction <maximumf>, %59, %cst_32 [1] : vector<2x4xf32> to vector<2xf32>
    %61 = vector.shape_cast %60 : vector<2xf32> to vector<2x1xf32>
    %62 = vector.extract_strided_slice %52 {offsets = [0, 12], sizes = [2, 4], strides = [1, 1]} : vector<2x16xf32> to vector<2x4xf32>
    %cst_33 = arith.constant dense<0xFF800000> : vector<2xf32>
    %63 = vector.multi_reduction <maximumf>, %62, %cst_33 [1] : vector<2x4xf32> to vector<2xf32>
    %64 = vector.shape_cast %63 : vector<2xf32> to vector<2x1xf32>
    %65 = tpu.concatenate %55, %58, %61, %64 in 1 : vector<2x1xf32>, vector<2x1xf32>, vector<2x1xf32>, vector<2x1xf32> -> vector<2x4xf32>
    %66 = vector.shape_cast %65 : vector<2x4xf32> to vector<2x1x4xf32>
    %c0_34 = arith.constant 0 : index
    %c3 = arith.constant 3 : index
    %c0_35 = arith.constant 0 : index
    %67 = vector.load %arg2[%c0_34, %c3, %c0_35] : memref<2x4x4xf32, #tpu.memory_space<vmem>>, vector<2x1x4xf32>
    tpu.vector_store %arg2[%c0_34, %c3, %c0_35], %66 {strides = array<i32>} : memref<2x4x4xf32, #tpu.memory_space<vmem>>, vector<2x1x4xf32>,
    return
  }
  func.func @transform_0(%arg0: i32) -> (i32, i32, i32) {
    %c0_i32 = arith.constant 0 : i32
    %c0_i32_0 = arith.constant 0 : i32
    %c0_i32_1 = arith.constant 0 : i32
    return %arg0, %c0_i32, %c0_i32_0 : i32, i32, i32
  }
  func.func @transform_1(%arg0: i32) -> (i32, i32, i32) {
    %c0_i32 = arith.constant 0 : i32
    %c0_i32_0 = arith.constant 0 : i32
    %c0_i32_1 = arith.constant 0 : i32
    return %arg0, %c0_i32, %c0_i32_0 : i32, i32, i32
  }
}

</mosaic_0001>

<bundles_post_ra>
// kernel: tpu_custom_call.1
= control target key start
LH: loop header
LB: loop body
LE: loop exit
PB: predicated region body
PF: predicated region fallthrough
CT: control target
= control target key end

     0   :  { %6 = vsyncpa [#allocation3], 0  ;;  %s645_s0 = inlined_call_operand.hbm [shape: f32[8,16,16], index: 0, kind: input, shape index: {}]   ;;  %s646_s1 = inlined_call_operand.vmem [shape: f32[8,4,4], index: 1, kind: output, shape index: {}]  }
   0x1   :  { %8 = vsyncpa [#allocation3 + $0x1], 0  ;;  %s514_s6 = smov 0   ;;  %s516_s7 = smov 0  }
   0x2   :  { %s518_s8 = smov 0   ;;  %s520_s9 = smov 0  }
   0x3 LB: > { %s379_s10 = sadd.s32 4294967295, %s500_s9   ;;  %s534_s11 = sadd.s32 1, %s500_s9   ;;  %s500_s9 = sphi %s520_s9, %s653_s9   ;;  %s496_s8 = sphi %s518_s8, %s652_s8   ;;  %s492_s7 = sphi %s516_s7, %s651_s7   ;;  %s488_s6 = sphi %s514_s6, %s650_s6  }
   0x4   : > { %s18_s12 = ssub.s32 %s500_s9, %s534_s11  ;;  %s21_s13 = sadd.s32 1, %s496_s8 }
   0x5   : > { %p19_p0 = scmp.eq.s32.totalorder %s18_s12, 0  ;;  %p28_p1 = scmp.ne.s32.totalorder %s496_s8, %s492_s7 }
   0x6   : > { %p29_p2 = scmp.eq.s32.totalorder %s500_s9, 0  ;;  %p34_p3 = scmp.ne.s32.totalorder %s492_s7, %s488_s6 }
   0x7   : > { %s544_s14 = scalar_select %p19_p0, %s496_s8, %s21_s13  }
   0x8   : > { %p546_p4 = por %p29_p2, %p28_p1  ;;  %p35_p5 = scmp.eq.s32.totalorder %s379_s10, 0 }
   0x9   : > { %p401_p6 = scmp.lt.s32.totalorder %s500_s9, 4  ;;  %s84_s17 = sand.u32 1, %s496_s8  }
   0xa   : > { %p553_p7 = por %p35_p5, %p34_p3  ;;  %s383_s18 = sshll.u32 %s84_s17, 5 }
   0xb   : > { %s394_s19 = sshll.u32 %s500_s9, 5  ;;  %s88_s23 = scalar_lea.vmem [#allocation2], %s383_s18 }
   0xc   : > { %s94_s22 = scalar_lea.hbm %s645_s0, %s394_s19  ;;  %s97_s24 = sshll.u32 %s88_s23, 4  ;;  %s98_s24 = int_to_ptr.vmem [resolvable:$true] %s97_s24 }
   0xd   : > { %s95_s25 = sshll.u32 %s94_s22, 4  ;;  %p564_p8 = pnand %p401_p6, %p546_p4  ;;  %s96_s25 = int_to_ptr.hbm [resolvable:$true] %s95_s25 }
   0xe   : > { %p387_p9 = scmp.ge.s32.totalorder %s500_s9, 1  ;;  %s85_s27 = scalar_lea.sflag [#allocation3], %s84_s17 }
   0xf   : > { %s436_s28 = sshra.s32 %s96_s25, 4  ;;  %p440_p11 = pneg %p564_p8  ;;  %s437_s28 = int_to_ptr.hbm [resolvable:$true] %s436_s28 }
  0x10   : > { %s438_s29 = scalar_lea.hbm %s437_s28, 32  ;;  %s443_s3 = scalar_lea.hbm %s645_s0, 128 }
  0x11   : > { %p439_p10 = scmp.ne.s32.totalorder %s437_s28, %s438_s29  ;;  %p444_p0 = scmp.lt.s32.totalorder %s437_s28, %s645_s0 }
  0x12   : > { %p445_p1 = scmp.lt.s32.totalorder %s443_s3, %s438_s29 }
  0x13   : > { %p441_p12 = pnand %p440_p11, %p439_p10 }
  0x14   : > { %p446_p2 = por %p445_p1, %p444_p0 }
  0x15   : > { %p442_p13 = pneg %p441_p12 }
  0x17   : > { %p447_p3 = pnand %p446_p2, %p442_p13 }
  0x19   : > { %450 = shalt.err (!%p447_p3)
}
  0x1a   : > { %s502_s6 = smov 128   ;;  %s503_s12 = smov 8  }
  0x1b   : > { %400 = dma.hbm_to_vmem [thread:$0]  (!%p564_p8), %s96_s25, 512, %s98_s24, %s85_s27, %s502_s6, %s502_s6, %s503_s12  }
  0x1c   : > { %p105_p4 = scmp.lt.s32.totalorder %s500_s9, 5 }
  0x1e   : > { %p106_p5 = pnand %p387_p9, %p105_p4 }
  0x1f   : > { %s111_s13 = sand.u32 (!%p106_p5), 1, %s492_s7  }
  0x20   : > { %109 = sbr.rel (%p106_p5) target bundleno = 219 (0xdb), region = 24  ;;  %s388_s15 = sshll.u32 (!%p106_p5), %s111_s13, 5 }
  0x21   : > { %s112_s17 = scalar_lea.sflag (!%p106_p5), [#allocation3], %s111_s13  ;;  %s115_s18 = scalar_lea.vmem (!%p106_p5), [#allocation2], %s388_s15 }
  0x25   : > { %483 = dma.done.wait (%p553_p7), %s112_s17, 512  }
  0x26   : > { %485 = vsyncadd (%p553_p7), %s112_s17, 4294966784  ;;  %vm144_vm0 = vcmask 125952   ;;  %v232_v0 = vld [vmem:[%s115_s18 + $0x8] sm:$0xf]  ;;  %v233_v1 = vld [vmem:[%s115_s18 + $0x18] sm:$0xf] }
  0x27   : > { %v192_v2 = vld [vmem:[%s115_s18 + $0x4] sm:$0xf]  ;;  %v234_v3 = vsel %vm144_vm0, %v232_v0, -inf  ;;  %v241_v4 = vsel %vm144_vm0, %v233_v1, -inf  ;;  %v193_v5 = vld [vmem:[%s115_s18 + $0x14] sm:$0xf] }
  0x28   : > { %v194_v6 = vsel %vm144_vm0, %v192_v2, -inf  ;;  %v235_v7 = vrot.slane %v234_v3, 4  ;;  %v242_v8 = vrot.slane %v241_v4, 4  ;;  %v201_v10 = vsel %vm144_vm0, %v193_v5, -inf  ;;  %v142_v11 = vld [vmem:[%s115_s18] sm:$0xf] }
  0x29   : > { %v195_v9 = vrot.slane %v194_v6, 4  ;;  %vm161_vm1 = vcmask 1041409   ;;  %v202_v12 = vrot.slane %v201_v10, 4  ;;  %v143_v13 = vld [vmem:[%s115_s18 + $0x10] sm:$0xf]  ;;  %v145_v14 = vsel %vm144_vm0, %v142_v11, -inf }
  0x2a   : > { %v272_v15 = vld [vmem:[%s115_s18 + $0xc] sm:$0xf]  ;;  %vm164_vm2 = vcmask 25600   ;;  %v236_v16 = vmax.f32 %v234_v3, %v235_v7  ;;  %v243_v17 = vmax.f32 %v241_v4, %v242_v8  ;;  %v146_v19 = vrot.slane %v145_v14, 4  ;;  %v273_v20 = vld [vmem:[%s115_s18 + $0x1c] sm:$0xf] }
  0x2b   : > { %v196_v18 = vmax.f32 %v194_v6, %v195_v9  ;;  %v203_v21 = vmax.f32 %v201_v10, %v202_v12  ;;  %v152_v22 = vsel %vm144_vm0, %v143_v13, -inf  ;;  %v274_v23 = vsel %vm144_vm0, %v272_v15, -inf  ;;  %s389_s16 = sshll.u32 %s379_s10, 1 }
  0x2c   : > { %v281_v24 = vsel %vm144_vm0, %v273_v20, -inf  ;;  %v237_v25 = vrot.slane %v236_v16, 2  ;;  %v244_v26 = vrot.slane %v243_v17, 2  ;;  %v147_v28 = vmax.f32 %v145_v14, %v146_v19  ;;  %p137_p6 = scmp.lt.s32.totalorder %s389_s16, 7 }
  0x2d   : > { %v197_v27 = vrot.slane %v196_v18, 2  ;;  %v204_v29 = vrot.slane %v203_v21, 2  ;;  %v153_v30 = vrot.slane %v152_v22, 4  ;;  %v275_v31 = vrot.slane %v274_v23, 4 }
  0x2e   : > { %v282_v32 = vrot.slane %v281_v24, 4  ;;  %v238_v33 = vmax.f32 %v236_v16, %v237_v25  ;;  %v245_v34 = vmax.f32 %v243_v17, %v244_v26  ;;  %v148_v36 = vrot.slane %v147_v28, 2  ;;  %s655_s16 = smov (!%p137_p6, %s389_s16), 7 }
  0x2f   : > { %v198_v35 = vmax.f32 %v196_v18, %v197_v27  ;;  %v205_v37 = vmax.f32 %v203_v21, %v204_v29  ;;  %v154_v38 = vmax.f32 %v152_v22, %v153_v30  ;;  %v276_v39 = vmax.f32 %v274_v23, %v275_v31  ;;  %s390_s19 = sshll.u32 %s655_s16, 2 }
  0x30   : > { %v283_v40 = vmax.f32 %v281_v24, %v282_v32  ;;  %v239_v41 = vrot.slane %v238_v33, 1  ;;  %v246_v42 = vrot.slane %v245_v34, 1  ;;  %v149_v44 = vmax.f32 %v147_v28, %v148_v36  ;;  %s140_s22 = scalar_lea.vmem %s646_s1, %s390_s19 }
  0x31   : > { %v199_v43 = vrot.slane %v198_v35, 1  ;;  %v206_v45 = vrot.slane %v205_v37, 1  ;;  %v155_v46 = vrot.slane %v154_v38, 2  ;;  %v277_v47 = vrot.slane %v276_v39, 2 }
  0x32   : > { %v284_v48 = vrot.slane %v283_v40, 2  ;;  %v240_v49 = vmax.f32 %v238_v33, %v239_v41  ;;  %v247_v50 = vmax.f32 %v245_v34, %v246_v42  ;;  %v150_v52 = vrot.slane %v149_v44, 1 }
  0x33   : > { %v200_v51 = vmax.f32 %v198_v35, %v199_v43  ;;  %v207_v53 = vmax.f32 %v205_v37, %v206_v45  ;;  %v156_v54 = vmax.f32 %v154_v38, %v155_v46  ;;  %v278_v56 = vmax.f32 %v276_v39, %v277_v47 }
  0x34   : > { %v250_v55 = vsel %vm161_vm1, %v247_v50, %v240_v49  ;;  %v285_v57 = vmax.f32 %v283_v40, %v284_v48  ;;  %v151_v60 = vmax.f32 %v149_v44, %v150_v52  ;;  %vm168_vm3 = vcmask 58400  }
  0x35   : > { %v252_v58 = vsel %vm164_vm2, %v250_v55, -inf  ;;  %v210_v59 = vsel %vm161_vm1, %v207_v53, %v200_v51  ;;  %v157_v61 = vrot.slane %v156_v54, 1  ;;  %v279_v1 = vrot.slane %v278_v56, 1 }
  0x36   : > { %253 = vmax.xlane.f32.xlu2 %v252_v58  ;;  %v212_v62 = vsel %vm164_vm2, %v210_v59, -inf  ;;  %v286_v2 = vrot.slane %v285_v57, 1  ;;  %v255_v4 = vsel %vm168_vm3, %v250_v55, -inf  ;;  %v215_v5 = vsel %vm168_vm3, %v210_v59, -inf }
  0x37   : > { %213 = vmax.xlane.f32.xlu1 %v212_v62  ;;  %v158_v63 = vmax.f32 %v156_v54, %v157_v61  ;;  %v280_v6 = vmax.f32 %v278_v56, %v279_v1  ;;  %vm172_vm4 = vcmask 91200   ;;  %vm176_vm5 = vcmask 124000  }
  0x38   : > { %v287_v7 = vmax.f32 %v285_v57, %v286_v2  ;;  %v258_v14 = vsel %vm172_vm4, %v250_v55, -inf  ;;  %v218_v15 = vsel %vm172_vm4, %v210_v59, -inf  ;;  %v261_v16 = vsel %vm176_vm5, %v250_v55, -inf }
  0x39   : > { %v162_v0 = vsel %vm161_vm1, %v158_v63, %v151_v60  ;;  %v221_v17 = vsel %vm176_vm5, %v210_v59, -inf  ;;  %vm180_vm6 = vcmask 7168   ;;  %vm184_vm7 = vcmask 23552  }
  0x3a   : > { %v165_v3 = vsel %vm164_vm2, %v162_v0, -inf  ;;  %v169_v8 = vsel %vm168_vm3, %v162_v0, -inf  ;;  %v290_v9 = vsel %vm161_vm1, %v287_v7, %v280_v6  ;;  %v173_v10 = vsel %vm172_vm4, %v162_v0, -inf }
  0x3b   : > { %166 = vmax.xlane.f32.xlu0 %v165_v3  ;;  %v295_v11 = vsel %vm168_vm3, %v290_v9, -inf  ;;  %v292_v12 = vsel %vm164_vm2, %v290_v9, -inf  ;;  %v298_v13 = vsel %vm172_vm4, %v290_v9, -inf  ;;  %v177_v18 = vsel %vm176_vm5, %v162_v0, -inf }
  0x3c   : > { %v301_v19 = vsel %vm176_vm5, %v290_v9, -inf  ;;  %vm182_vm8 = vcmask 15360   ;;  %vm189_vm9 = vcmask 24576  }
  0x3e   : > { %256 = vmax.xlane.f32.xlu2 %v255_v4 }
  0x3f   : > { %216 = vmax.xlane.f32.xlu1 %v215_v5 }
  0x43   : > { %170 = vmax.xlane.f32.xlu0 %v169_v8 }
  0x46   : > { %174 = vmax.xlane.f32.xlu2 %v173_v10 }
  0x47   : > { %296 = vmax.xlane.f32.xlu1 %v295_v11 }
  0x4b   : > { %293 = vmax.xlane.f32.xlu0 %v292_v12 }
  0x4e   : > { %299 = vmax.xlane.f32.xlu2 %v298_v13 }
  0x4f   : > { %259 = vmax.xlane.f32.xlu1 %v258_v14 }
  0x53   : > { %219 = vmax.xlane.f32.xlu0 %v218_v15 }
  0x56   : > { %262 = vmax.xlane.f32.xlu2 %v261_v16 }
  0x57   : > { %222 = vmax.xlane.f32.xlu1 %v221_v17 }
  0x5b   : > { %178 = vmax.xlane.f32.xlu0 %v177_v18 }
  0x63   : > { %302 = vmax.xlane.f32.xlu0 %v301_v19 }
  0xa9   : > { %v254_v20 = vpop.xlane.xlu2 %253 }
  0xaa   : > { %v214_v21 = vpop.xlane.xlu1 %213 }
  0xae   : > { %v167_v22 = vpop.xlane.xlu0 %166 }
  0xb1   : > { %v257_v23 = vpop.xlane.xlu2 %256 }
  0xb2   : > { %v217_v24 = vpop.xlane.xlu1 %216  ;;  %v264_v32 = vsel %vm180_vm6, %v254_v20, %v257_v23 }
  0xb3   : > { %v224_v33 = vsel %vm180_vm6, %v214_v21, %v217_v24 }
  0xb6   : > { %v171_v25 = vpop.xlane.xlu0 %170 }
  0xb7   : > { %v181_v42 = vsel %vm180_vm6, %v167_v22, %v171_v25 }
  0xb9   : > { %v175_v26 = vpop.xlane.xlu2 %174 }
  0xba   : > { %v297_v27 = vpop.xlane.xlu1 %296  ;;  %v183_v43 = vsel %vm182_vm8, %v181_v42, %v175_v26 }
  0xbe   : > { %v294_v28 = vpop.xlane.xlu0 %293 }
  0xbf   : > { %v304_v47 = vsel %vm180_vm6, %v294_v28, %v297_v27 }
  0xc1   : > { %v300_v29 = vpop.xlane.xlu2 %299 }
  0xc2   : > { %v260_v30 = vpop.xlane.xlu1 %259  ;;  %v305_v48 = vsel %vm182_vm8, %v304_v47, %v300_v29 }
  0xc3   : > { %v265_v34 = vsel %vm182_vm8, %v264_v32, %v260_v30 }
  0xc6   : > { %v220_v31 = vpop.xlane.xlu0 %219 }
  0xc7   : > { %v225_v36 = vsel %vm182_vm8, %v224_v33, %v220_v31 }
  0xc9   : > { %v263_v35 = vpop.xlane.xlu2 %262 }
  0xca   : > { %v223_v37 = vpop.xlane.xlu1 %222  ;;  %v266_v38 = vsel %vm184_vm7, %v265_v34, %v263_v35 }
  0xcb   : > { %v226_v39 = vsel %vm184_vm7, %v225_v36, %v223_v37  ;;  %v268_v40 = vrot.slane %v266_v38, 1  ;;  %270 = vst.msk [vmem:[%s140_s22 + $0x2] sm:$0x1] %vm189_vm9, %v266_v38 }
  0xcc   : > { %v228_v41 = vrot.slane %v226_v39, 1  ;;  %230 = vst.msk [vmem:[%s140_s22 + $0x1] sm:$0x1] %vm189_vm9, %v226_v39 }
  0xcd   : > { %271 = vst.msk [vmem:[%s140_s22 + $0x6] sm:$0x1] %vm189_vm9, %v268_v40 }
  0xce   : > { %231 = vst.msk [vmem:[%s140_s22 + $0x5] sm:$0x1] %vm189_vm9, %v228_v41  ;;  %v179_v44 = vpop.xlane.xlu0 %178 }
  0xcf   : > { %v185_v45 = vsel %vm184_vm7, %v183_v43, %v179_v44 }
  0xd0   : > { %v187_v46 = vrot.slane %v185_v45, 1  ;;  %190 = vst.msk [vmem:[%s140_s22] sm:$0x1] %vm189_vm9, %v185_v45 }
  0xd2   : > { %191 = vst.msk [vmem:[%s140_s22 + $0x4] sm:$0x1] %vm189_vm9, %v187_v46 }
  0xd6   : > { %v303_v49 = vpop.xlane.xlu0 %302 }
  0xd7   : > { %v306_v50 = vsel %vm184_vm7, %v305_v48, %v303_v49 }
  0xd8   : > { %v308_v51 = vrot.slane %v306_v50, 1  ;;  %310 = vst.msk [vmem:[%s140_s22 + $0x3] sm:$0x1] %vm189_vm9, %v306_v50 }
  0xda   : > { %311 = vst.msk [vmem:[%s140_s22 + $0x7] sm:$0x1] %vm189_vm9, %v308_v51 }
  0xdb PF: > { %p11_p7 = scmp.ge.s32.totalorder %s534_s11, 6   ;;  %s650_s6 = smov %s492_s7 }
  0xdc   : > { %s651_s7 = smov %s496_s8  ;;  %s652_s8 = smov %s544_s14 }
  0xdd   : > { %s653_s9 = smov %s534_s11  ;;  %13 = sbr.rel (!%p11_p7) target bundleno = 3 (0x3), region = 64 }
  0xe2   :  { %334 = vsyncpa [#allocation3], 1 }
  0xe3   :  { %336 = vsyncpa [#allocation3 + $0x1], 1 }

</bundles_post_ra>
